<compile_context>
chip_gen: v6e
topology: v6e:2x2x1
jax: 0.10.0
libtpu: 0.0.40
codegen_flags: <defaults>
</compile_context>

<pallas_src>
import functools

import jax
import jax.numpy as jnp
from jax.experimental import pallas as pl
from jax.experimental.pallas import tpu as pltpu


def _round_up(a, m):
    return (a + m - 1) // m * m


def _dsconv1d_kernel(x_ref, w_eff_ref, b_eff_ref, o_ref, xpad_ref, *,
                     kernel_size, dilation, padding, l_tile, l_in, c_in, win,
                     compute_dtype, fuse_taps):
    # x_ref:     (C_in, L)             raw input row for this batch element (resident across j)
    # w_eff_ref: (C_out_pad, K*C_in)   folded depthwise*pointwise weights (compute dtype)
    # b_eff_ref: (C_out_pad, 1)        folded bias (pw_b + pw_w @ dw_b), f32
    # o_ref:     (C_out_pad, l_tile)   output tile
    # xpad_ref:  (C_in, l_pad_total)   VMEM scratch: zero-padded row, built once per batch row
    j = pl.program_id(1)

    @pl.when(j == 0)
    def _():
        # Build the zero-padded row in VMEM once per batch element (replaces the wrapper-side
        # jnp.pad that cost an extra full HBM read+write of the input).
        if padding > 0:
            xpad_ref[:, :padding] = jnp.zeros((c_in, padding), compute_dtype)
        right = xpad_ref.shape[1] - (padding + l_in)
        if right > 0:
            xpad_ref[:, padding + l_in:] = jnp.zeros((c_in, right), compute_dtype)
        xpad_ref[:, padding:padding + l_in] = x_ref[...].astype(compute_dtype)

    # One aligned window load (start is a 128-multiple whenever the L axis is tiled; the width is
    # l_tile + round_up(halo, 128)); per-tap shifts are static in-register slices.
    start = pl.multiple_of(j * l_tile, 128)
    xw = xpad_ref[:, pl.ds(start, win)]                          # (C_in, win)
    taps = [xw[:, k * dilation:k * dilation + l_tile] for k in range(kernel_size)]

    if fuse_taps:
        # Small C_in: stack taps so the contraction dim is K*C_in (better MXU fill).
        xs = jnp.concatenate(taps, axis=0)                       # (K*C_in, l_tile)
        acc = jnp.dot(w_eff_ref[...], xs, preferred_element_type=jnp.float32)
    else:
        # Large C_in: K accumulating dots, no (K*C_in, l_tile) VMEM temp.
        acc = jnp.dot(w_eff_ref[:, :c_in], taps[0],
                      preferred_element_type=jnp.float32)
        for k in range(1, kernel_size):
            acc = acc + jnp.dot(w_eff_ref[:, k * c_in:(k + 1) * c_in], taps[k],
                                preferred_element_type=jnp.float32)

    o_ref[...] = (acc + b_eff_ref[...]).astype(o_ref.dtype)


def _vmem_capacity_bytes():
    # Generation-aware VMEM capacity; conservative 64 MiB (v7x) fallback if the query fails.
    try:
        cap = int(pltpu.get_tpu_info().vmem_capacity_bytes)
        return min(max(cap, 16 * 1024 * 1024), 128 * 1024 * 1024)
    except Exception:
        return 64 * 1024 * 1024


def depthwise_separable_conv1d(x, dw_w, dw_b, pw_w, pw_b, *,
                               kernel_size, dilation=1, padding=0,
                               compute_dtype=None, max_l_tile=None):
    """x: (N, C_in, L) -> (N, C_out, L_out), L_out = L + 2*padding - dilation*(K-1)."""
    n, c_in, l_in = x.shape
    c_out = pw_w.shape[0]
    halo = dilation * (kernel_size - 1)
    l_out = l_in + 2 * padding - halo
    assert l_out > 0, "output length must be positive"

    compute_dtype = jnp.dtype(compute_dtype if compute_dtype is not None else x.dtype)
    out_dtype = x.dtype

    # Pad C_out up to a sublane multiple so output stores / MXU result tiles are unmasked.
    sub = 16 if jnp.dtype(out_dtype).itemsize == 2 else 8
    c_out_pad = _round_up(c_out, sub)

    halo128 = _round_up(halo, 128) if halo > 0 else 0

    # ---- VMEM-budget-driven tile selection (generation-aware) ------------------------------
    budget = int(_vmem_capacity_bytes() * 0.7)
    in_b = jnp.dtype(x.dtype).itemsize
    cd_b = compute_dtype.itemsize
    out_b = jnp.dtype(out_dtype).itemsize

    def footprint(lt):
        n_t = -(-l_out // lt)
        l_pad = n_t * lt + halo128
        fixed = 2 * c_in * l_in * in_b                                        # x row (2 bufs)
        fixed += 2 * (c_out_pad * kernel_size * c_in * cd_b + c_out_pad * 4)  # weights + bias
        scratch = c_in * l_pad * cd_b                                         # padded-row scratch
        outbuf = 2 * c_out_pad * lt * out_b                                   # output (2 bufs)
        window = c_in * (lt + halo128) * cd_b                                 # in-register window
        taps_tmp = kernel_size * c_in * lt * cd_b if c_in < 64 else 0         # fused tap stack
        acc = c_out_pad * lt * 4                                              # f32 accumulator
        return fixed + scratch + outbuf + window + taps_tmp + acc

    cap_tile = max_l_tile if max_l_tile is not None else 8192
    if l_out <= cap_tile and footprint(l_out) <= budget:
        l_tile = l_out                                   # single full-extent tile
    else:
        l_tile = None
        for cand in (8192, 4096, 2048, 1024, 512, 256, 128):
            if cand <= cap_tile and cand < l_out and footprint(cand) <= budget:
                l_tile = cand
                break
        if l_tile is None:
            # TODO(synk): halo-tile x along L (manual DMA via memory_space=pl.ANY) when even a
            # 128-wide tile plus the full resident row overflows the VMEM budget.
            l_tile = min(128, l_out)
    n_l_tiles = -(-l_out // l_tile)
    l_pad_total = n_l_tiles * l_tile + halo128
    win = l_tile + halo128

    # ---- Fold the two convolutions at trace time (params only) -----------------------------
    #   W_eff[o, k*C_in + c] = pw_w[o, c] * dw_w[c, k]
    #   b_eff[o]             = pw_b[o] + sum_c pw_w[o, c] * dw_b[c]
    dw_w2 = dw_w.reshape(c_in, kernel_size).astype(jnp.float32)
    pw_w2 = pw_w.reshape(c_out, c_in).astype(jnp.float32)
    w_eff = (pw_w2[:, None, :] * jnp.swapaxes(dw_w2, 0, 1)[None, :, :])
    w_eff = w_eff.reshape(c_out, kernel_size * c_in)
    b_eff = (pw_b.reshape(c_out, 1).astype(jnp.float32)
             + pw_w2 @ dw_b.reshape(c_in, 1).astype(jnp.float32))
    if c_out_pad != c_out:
        w_eff = jnp.pad(w_eff, ((0, c_out_pad - c_out), (0, 0)))
        b_eff = jnp.pad(b_eff, ((0, c_out_pad - c_out), (0, 0)))
    w_eff = w_eff.astype(compute_dtype)   # bf16 operands on request; accumulation stays f32

    kernel = functools.partial(
        _dsconv1d_kernel,
        kernel_size=kernel_size, dilation=dilation, padding=padding,
        l_tile=l_tile, l_in=l_in, c_in=c_in, win=win,
        compute_dtype=compute_dtype, fuse_taps=(c_in < 64))

    out = pl.pallas_call(
        kernel,
        out_shape=jax.ShapeDtypeStruct((n, c_out_pad, l_out), out_dtype),
        grid_spec=pltpu.PrefetchScalarGridSpec(
            num_scalar_prefetch=0,
            grid=(n, n_l_tiles),
            in_specs=[
                # Raw input row; block index constant along j -> DMA'd once per batch element
                # and kept VMEM-resident across the length tiles.
                pl.BlockSpec((pl.Squeezed(), c_in, l_in), lambda b, j: (b, 0, 0)),
                pl.BlockSpec((c_out_pad, kernel_size * c_in), lambda b, j: (0, 0)),
                pl.BlockSpec((c_out_pad, 1), lambda b, j: (0, 0)),
            ],
            out_specs=pl.BlockSpec((pl.Squeezed(), c_out_pad, l_tile),
                                   lambda b, j: (b, 0, j)),
            scratch_shapes=[pltpu.VMEM((c_in, l_pad_total), compute_dtype)],
        ),
        compiler_params=pltpu.CompilerParams(
            # Batch axis is megacore-sharded; the L axis must stay sequential per core
            # (the padded-row scratch is initialized at j == 0).
            dimension_semantics=("parallel", "arbitrary"),
            vmem_limit_bytes=budget),
    )(x, w_eff, b_eff)

    return out[:, :c_out, :] if c_out_pad != c_out else out


def _reference(x, dw_w, dw_b, pw_w, pw_b, *, kernel_size, dilation, padding):
    # Pure-JAX reference (same math as PyTorch's depthwise + pointwise Conv1d), f32 throughout.
    n, c_in, l = x.shape
    l_out = l + 2 * padding - dilation * (kernel_size - 1)
    x_pad = jnp.pad(x.astype(jnp.float32), ((0, 0), (0, 0), (padding, padding)))
    dw = jnp.zeros((n, c_in, l_out), dtype=jnp.float32)
    for k in range(kernel_size):
        off = k * dilation
        dw = dw + x_pad[:, :, off:off + l_out] * dw_w[:, 0, k].astype(jnp.float32)[None, :, None]
    dw = dw + dw_b.astype(jnp.float32)[None, :, None]
    out = jnp.einsum("oc,ncl->nol", pw_w[:, :, 0].astype(jnp.float32), dw,
                     precision=jax.lax.Precision.HIGHEST)
    return out + pw_b.astype(jnp.float32)[None, :, None]


def _run_case(key, batch, c_in, c_out, length, kernel_size, dilation, padding,
              compute_dtype=None, max_l_tile=None, atol=1e-3, rtol=1e-3):
    k1, k2, k3, k4, k5 = jax.random.split(key, 5)
    x = jax.random.normal(k1, (batch, c_in, length), dtype=jnp.float32)
    dw_w = jax.random.normal(k2, (c_in, 1, kernel_size), dtype=jnp.float32) * 0.3
    dw_b = jax.random.normal(k3, (c_in,), dtype=jnp.float32) * 0.1
    pw_w = jax.random.normal(k4, (c_out, c_in, 1), dtype=jnp.float32) * 0.3
    pw_b = jax.random.normal(k5, (c_out,), dtype=jnp.float32) * 0.1

    out = depthwise_separable_conv1d(
        x, dw_w, dw_b, pw_w, pw_b,
        kernel_size=kernel_size, dilation=dilation, padding=padding,
        compute_dtype=compute_dtype, max_l_tile=max_l_tile)
    out = jax.block_until_ready(out)

    ref = _reference(x, dw_w, dw_b, pw_w, pw_b,
                     kernel_size=kernel_size, dilation=dilation, padding=padding)
    l_out = length + 2 * padding - dilation * (kernel_size - 1)
    assert out.shape == (batch, c_out, l_out), (out.shape, (batch, c_out, l_out))
    err = float(jnp.max(jnp.abs(out.astype(jnp.float32) - ref)))
    assert jnp.allclose(out.astype(jnp.float32), ref, atol=atol, rtol=rtol), \
        f"mismatch vs reference (max abs err {err:.3e})"


if __name__ == "__main__":
    key = jax.random.PRNGKey(0)
    k_a, k_b, k_c, k_d = jax.random.split(key, 4)

    # Case 1: module config at small shapes (single full-extent L tile, fused tap-stack path).
    _run_case(k_a, batch=2, c_in=4, c_out=8, length=16,
              kernel_size=3, dilation=1, padding=1, atol=1e-4, rtol=1e-4)

    # Case 2: exercises L tiling (3 lane-dense 128-wide tiles, ragged masked last tile) + dilation.
    _run_case(k_b, batch=2, c_in=4, c_out=8, length=300,
              kernel_size=3, dilation=2, padding=2, max_l_tile=128, atol=1e-4, rtol=1e-4)

    # Case 3: large C_in -> K accumulating dots (no (K*C_in, l_tile) tap-stack temp).
    _run_case(k_c, batch=2, c_in=64, c_out=16, length=200,
              kernel_size=3, dilation=1, padding=1, atol=1e-3, rtol=1e-3)

    # Case 4: bf16 MXU operands with f32 accumulation (looser tolerance).
    _run_case(k_d, batch=2, c_in=4, c_out=8, length=16,
              kernel_size=3, dilation=1, padding=1,
              compute_dtype=jnp.bfloat16, atol=1e-1, rtol=5e-2)

    print("KERNEL_OK")
</pallas_src>

<mosaic_0001>
module attributes {stable_mosaic.version = 11 : i64} {
  func.func @_dsconv1d_kernel(%arg0: i32, %arg1: i32, %arg2: memref<1x4x16xf32, #tpu.memory_space<vmem>>, %arg3: memref<8x12xf32, #tpu.memory_space<vmem>>, %arg4: memref<8x1xf32, #tpu.memory_space<vmem>>, %arg5: memref<1x8x16xf32, #tpu.memory_space<vmem>>, %arg6: memref<4x144xf32, #tpu.memory_space<vmem>>) attributes {dimension_semantics = [#tpu.dimension_semantics<parallel>, #tpu.dimension_semantics<arbitrary>], iteration_bounds = array<i64: 2, 1>, scalar_prefetch = 0 : i64, scratch_operands = 1 : i64, tpu.core_type = #tpu.core_type<tc>, window_params = [{transform_indices = @transform_0, window_bounds = array<i64: 1, 4, 16>}, {pipeline_mode = #tpu.pipeline_mode<synchronous>, transform_indices = @transform_1, window_bounds = array<i64: 8, 12>}, {pipeline_mode = #tpu.pipeline_mode<synchronous>, transform_indices = @transform_2, window_bounds = array<i64: 8, 1>}, {transform_indices = @transform_3, window_bounds = array<i64: 1, 8, 16>}]} {
    %c0_i32 = arith.constant 0 : i32
    %0 = arith.cmpi eq, %arg1, %c0_i32 : i32
    %1 = arith.extui %0 : i1 to i32
    %c0_i32_0 = arith.constant 0 : i32
    %2 = arith.cmpi ne, %1, %c0_i32_0 : i32
    scf.if %2 {
      %cst_8 = arith.constant 0.000000e+00 : f32
      %19 = vector.broadcast %cst_8 : f32 to vector<4x1xf32>
      %c0_9 = arith.constant 0 : index
      %c0_10 = arith.constant 0 : index
      %20 = vector.load %arg6[%c0_9, %c0_10] : memref<4x144xf32, #tpu.memory_space<vmem>>, vector<4x1xf32>
      tpu.vector_store %arg6[%c0_9, %c0_10], %19 {strides = array<i32>} : memref<4x144xf32, #tpu.memory_space<vmem>>, vector<4x1xf32>,
      %cst_11 = arith.constant 0.000000e+00 : f32
      %21 = vector.broadcast %cst_11 : f32 to vector<4x127xf32>
      %c0_12 = arith.constant 0 : index
      %c17 = arith.constant 17 : index
      %22 = vector.load %arg6[%c0_12, %c17] : memref<4x144xf32, #tpu.memory_space<vmem>>, vector<4x127xf32>
      tpu.vector_store %arg6[%c0_12, %c17], %21 {strides = array<i32>} : memref<4x144xf32, #tpu.memory_space<vmem>>, vector<4x127xf32>,
      %c0_13 = arith.constant 0 : index
      %c0_14 = arith.constant 0 : index
      %c0_15 = arith.constant 0 : index
      %23 = vector.load %arg2[%c0_13, %c0_14, %c0_15] : memref<1x4x16xf32, #tpu.memory_space<vmem>>, vector<1x4x16xf32>
      %24 = vector.shape_cast %23 : vector<1x4x16xf32> to vector<4x16xf32>
      %c0_16 = arith.constant 0 : index
      %c1 = arith.constant 1 : index
      %25 = vector.load %arg6[%c0_16, %c1] : memref<4x144xf32, #tpu.memory_space<vmem>>, vector<4x16xf32>
      tpu.vector_store %arg6[%c0_16, %c1], %24 {strides = array<i32>} : memref<4x144xf32, #tpu.memory_space<vmem>>, vector<4x16xf32>,
    } else {
    }
    %c16_i32 = arith.constant 16 : i32
    %3 = arith.muli %arg1, %c16_i32 : i32
    %4 = tpu.assume_multiple %3, 128 : i32
    %c0 = arith.constant 0 : index
    %5 = arith.index_cast %4 : i32 to index
    %6 = vector.load %arg6[%c0, %5] : memref<4x144xf32, #tpu.memory_space<vmem>>, vector<4x144xf32>
    %7 = vector.extract_strided_slice %6 {offsets = [0, 0], sizes = [4, 16], strides = [1, 1]} : vector<4x144xf32> to vector<4x16xf32>
    %8 = vector.extract_strided_slice %6 {offsets = [0, 1], sizes = [4, 16], strides = [1, 1]} : vector<4x144xf32> to vector<4x16xf32>
    %9 = vector.extract_strided_slice %6 {offsets = [0, 2], sizes = [4, 16], strides = [1, 1]} : vector<4x144xf32> to vector<4x16xf32>
    %10 = tpu.concatenate %7, %8, %9 in 0 : vector<4x16xf32>, vector<4x16xf32>, vector<4x16xf32> -> vector<12x16xf32>
    %c0_1 = arith.constant 0 : index
    %c0_2 = arith.constant 0 : index
    %11 = vector.load %arg3[%c0_1, %c0_2] : memref<8x12xf32, #tpu.memory_space<vmem>>, vector<8x12xf32>
    %cst = arith.constant dense<0.000000e+00> : vector<8x16xf32>
    %12 = tpu.matmul %11, %10, %cst {dimension_numbers = #tpu.dot_dimension_numbers<[1], [0], [0], [1], [0, 0, 1, 1], [], []>} : vector<8x12xf32>, vector<12x16xf32>, vector<8x16xf32> -> vector<8x16xf32>
    %c0_3 = arith.constant 0 : index
    %c0_4 = arith.constant 0 : index
    %13 = vector.load %arg4[%c0_3, %c0_4] : memref<8x1xf32, #tpu.memory_space<vmem>>, vector<8x1xf32>
    %14 = vector.broadcast %13 : vector<8x1xf32> to vector<8x16xf32>
    %15 = arith.addf %12, %14 : vector<8x16xf32>
    %c0_5 = arith.constant 0 : index
    %c0_6 = arith.constant 0 : index
    %c0_7 = arith.constant 0 : index
    %16 = vector.load %arg5[%c0_5, %c0_6, %c0_7] : memref<1x8x16xf32, #tpu.memory_space<vmem>>, vector<1x8x16xf32>
    %17 = vector.shape_cast %16 : vector<1x8x16xf32> to vector<8x16xf32>
    %18 = vector.shape_cast %15 : vector<8x16xf32> to vector<1x8x16xf32>
    tpu.vector_store %arg5[%c0_5, %c0_6, %c0_7], %18 {strides = array<i32>} : memref<1x8x16xf32, #tpu.memory_space<vmem>>, vector<1x8x16xf32>,
    return
  }
  func.func @transform_0(%arg0: i32, %arg1: i32) -> (i32, i32, i32) {
    %c0_i32 = arith.constant 0 : i32
    %c0_i32_0 = arith.constant 0 : i32
    %c0_i32_1 = arith.constant 0 : i32
    return %arg0, %c0_i32, %c0_i32_0 : i32, i32, i32
  }
  func.func @transform_1(%arg0: i32, %arg1: i32) -> (i32, i32) {
    %c0_i32 = arith.constant 0 : i32
    %c0_i32_0 = arith.constant 0 : i32
    %c0_i32_1 = arith.constant 0 : i32
    return %c0_i32, %c0_i32_0 : i32, i32
  }
  func.func @transform_2(%arg0: i32, %arg1: i32) -> (i32, i32) {
    %c0_i32 = arith.constant 0 : i32
    %c0_i32_0 = arith.constant 0 : i32
    %c0_i32_1 = arith.constant 0 : i32
    return %c0_i32, %c0_i32_0 : i32, i32
  }
  func.func @transform_3(%arg0: i32, %arg1: i32) -> (i32, i32, i32) {
    %c0_i32 = arith.constant 0 : i32
    %c0_i32_0 = arith.constant 0 : i32
    return %arg0, %c0_i32, %arg1 : i32, i32, i32
  }
}

</mosaic_0001>

<bundles_post_ra>
// kernel: tpu_custom_call.1
= control target key start
LH: loop header
LB: loop body
LE: loop exit
PB: predicated region body
PF: predicated region fallthrough
CT: control target
= control target key end

     0   :  { %8 = vsyncpa [#allocation4], 0  ;;  %s772_s0 = inlined_call_operand.vmem [shape: f32[2,4,16], index: 0, kind: input, shape index: {}]   ;;  %s773_s1 = inlined_call_operand.hbm [shape: f32[8,12], index: 1, kind: input, shape index: {}]   ;;  %s774_s2 = inlined_call_operand.vmem [shape: f32[8,1], index: 2, kind: input, shape index: {}]   ;;  %s775_s3 = inlined_call_operand.hbm [shape: f32[2,8,16], index: 3, kind: output, shape index: {}]  }
   0x1   :  { %9 = vsyncpa [#allocation5], 0 }
   0x2   :  { %11 = vsyncpa [#allocation5 + $0x1], 0  ;;  %s643_s12 = smov 0   ;;  %s645_s13 = smov 0  }
   0x3   :  { %s647_s14 = smov 0   ;;  %s649_s15 = smov 0  }
   0x4   :  { %s651_s16 = smov 0   ;;  %s653_s17 = smov 0  }
   0x5 LB: > { %s407_s18 = sadd.s32 4294967295, %s613_s17   ;;  %s408_s19 = sadd.s32 4294967294, %s613_s17   ;;  %s613_s17 = sphi %s653_s17, %s17_s17   ;;  %s609_s16 = sphi %s651_s16, %s784_s16   ;;  %s605_s15 = sphi %s649_s15, %s783_s15   ;;  %s601_s14 = sphi %s647_s14, %s782_s14   ;;  %s597_s13 = sphi %s645_s13, %s781_s13   ;;  %s593_s12 = sphi %s643_s12, %s780_s12  }
   0x6   : > { %s29_s20 = sadd.s32 1, %s609_s16  ;;  %s106_s21 = sadd.s32 1, %s601_s14 }
   0x7   : > { %p31_p0 = scmp.ge.s32.totalorder %s29_s20, 2  ;;  %p116_p1 = scmp.ne.s32.totalorder %s601_s14, %s597_s13 }
   0x8   : > { %p117_p2 = scmp.eq.s32.totalorder %s407_s18, 1  ;;  %p122_p3 = scmp.ne.s32.totalorder %s597_s13, %s593_s12 }
   0x9   : > { %s786_s20 = smov (%p31_p0, %s29_s20), 0  ;;  %p123_p5 = scmp.eq.s32.totalorder %s408_s19, 1 }
   0xa   : > { %p683_p4 = por %p117_p2, %p116_p1  ;;  %s101_s23 = ssub.s32 %s609_s16, %s786_s20 }
   0xb   : > { %p409_p6 = scmp.ge.s32.totalorder %s613_s17, 1  ;;  %p104_p7 = scmp.eq.s32.totalorder %s101_s23, 0 }
   0xc   : > { %p690_p8 = por %p123_p5, %p122_p3  ;;  %p130_p9 = scmp.lt.s32.totalorder %s613_s17, 3 }
   0xd   : > { %s696_s25 = scalar_select %p104_p7, %s601_s14, %s106_s21  }
   0xe   : > { %p698_p10 = pnand %p409_p6, %p130_p9  ;;  %p702_p11 = scmp.eq.s32.totalorder %s407_s18, 0 }
   0xf   : > { %s615_s28 = smov [#allocation3]  }
  0x10   : > { %p438_p12 = pneg %p698_p10  ;;  %s143_s29 = sshll.u32 %s615_s28, 4  ;;  %s144_s29 = int_to_ptr.vmem [resolvable:$true] %s143_s29 }
  0x11   : > { %s518_s30 = scalar_lea.vmem %s144_s29, 128  ;;  %p526_p5 = scmp.lt.s32.totalorder %s144_s29, %s144_s29 }
  0x12   : > { %p439_p13 = pnand %p702_p11, %p438_p12  ;;  %p519_p1 = scmp.ne.s32.totalorder %s144_s29, %s518_s30 }
  0x13   : > { %p527_p6 = scmp.lt.s32.totalorder %s518_s30, %s518_s30 }
  0x14   : > { %p509_p0 = pneg %p439_p13 }
  0x15   : > { %p528_p7 = por %p527_p6, %p526_p5 }
  0x16   : > { %p521_p2 = pnand %p519_p1, %p509_p0 }
  0x18   : > { %p522_p3 = pneg %p521_p2 }
  0x1a   : > { %p529_p9 = pnand %p528_p7, %p522_p3 }
  0x1c   : > { %532 = shalt.err (!%p529_p9)
}
  0x1d   : > { %441 = dma.hbm_to_vmem [thread:$0]  (!%p439_p13), %s773_s1, 128, %s144_s29, [#allocation4]  }
  0x1e   : > { %166 = sbr.rel (%p698_p10) target bundleno = 493 (0x1ed), region = 32 }
  0x23   : > { %584 = dma.done.wait (%p702_p11), [#allocation4], 128  }
  0x24   : > { %586 = vsyncadd (%p702_p11), [#allocation4], 4294967168  ;;  %p189_p12 = scmp.lt.s32.totalorder %s605_s15, 1  ;;  %vm197_vm0 = vcmask 3072   ;;  %vm199_vm1 = vcmask 1043592   ;;  %vm200_vm2 = vcmask 130052  }
  0x25   : > { %v616_v0 = vmov 0.0   ;;  %vm201_vm3 = vmor %vm200_vm2, %vm199_vm1  ;;  %s617_s11 = smov 1   ;;  %vm208_vm4 = vcmask 134152   ;;  %vm618_vm5 = vmmov 0   ;;  %v619_v3 = vmov 0   ;;  %s620_s18 = smov 126  }
  0x26   : > { %198 = vst.msk [vmem:[#allocation2] sm:$0xf] %vm197_vm0, %v616_v0  ;;  %425 = vmatprep.subr.mxu0 %v616_v0  ;;  %s190_s6 = scalar_select %p189_p12, %s605_s15, 1  ;;  %429 = vmatprep.mubr.msk.f32.mxu0 %vm618_vm5, %v616_v0  ;;  %v226_v6 = vld [vmem:[%s774_s2] sm:$0xff]  ;;  %vm223_vm6 = vcmask 1043456   ;;  %v225_v9 = vld [vmem:[#allocation3] sm:$0xff] }
  0x27   : > { %202 = vst.msk [vmem:[#allocation2] sm:$0xff] %vm201_vm3, %v616_v0  ;;  %504 = vset.pattern.permute.xlu1 %v619_v3  ;;  %505 = vset.pattern.permute.xlu0 %v619_v3  ;;  %s621_s19 = smov 127   ;;  %vm232_vm7 = vcmask 97280   ;;  %s186_s26 = sand.u32 1, %s597_s13   ;;  %vm308_vm8 = vcmask 130048  }
  0x28   : > { %s415_s7 = sshll.u32 %s190_s6, 2  ;;  %s414_s27 = sshll.u32 %s186_s26, 3 }
  0x29   : > { %s192_s10 = scalar_lea.vmem %s772_s0, %s415_s7  ;;  %s419_s28 = sshll.u32 %s605_s15, 7 }
  0x2a   : > { %v203_v1 = vld [vmem:[%s192_s10] sm:$0xf]  ;;  %s188_s29 = scalar_lea.vmem [#allocation6], %s414_s27  ;;  %s732_s6 = scalar_lea.hbm %s775_s3, %s419_s28 }
  0x2b   : > { %205 = vrot.lane.b32.xlu0 %v203_v1, %s617_s11  ;;  %s325_s30 = sshll.u32 %s188_s29, 4  ;;  %s311_s7 = scalar_lea.sflag [#allocation5], %s186_s26  ;;  %s326_s30 = int_to_ptr.vmem [resolvable:$true] %s325_s30 }
  0x2c   : > { %s533_s8 = scalar_lea.vmem %s326_s30, 128  ;;  %s622_s15 = smov [#allocation6]  }
  0x2d   : > { %p534_p10 = scmp.ne.s32.totalorder %s326_s30, %s533_s8  ;;  %s537_s9 = sshll.u32 %s622_s15, 4  ;;  %s538_s9 = int_to_ptr.vmem [resolvable:$false] %s537_s9 }
  0x2e   : > { %s539_s10 = scalar_lea.vmem %s538_s9, 256  ;;  %p540_p0 = scmp.lt.s32.totalorder %s326_s30, %s538_s9 }
  0x2f   : > { %p535_p11 = pnand %p534_p10, %p683_p4  ;;  %p541_p1 = scmp.lt.s32.totalorder %s539_s10, %s533_s8 }
  0x31   : > { %p536_p13 = pneg %p535_p11  ;;  %p542_p2 = por %p541_p1, %p540_p0 }
  0x33   : > { %p543_p3 = pnand %p542_p2, %p536_p13 }
  0x9d   : > { %v206_v2 = vpop.permute.xlu0 %205 }
  0x9e   : > { %209 = vst.msk [vmem:[#allocation2] sm:$0xf] %vm208_vm4, %v206_v2 }
  0xa5   : > { %v215_v4 = vld [vmem:[#allocation2] sm:$0xff] }
  0xa6   : > { %221 = vrot.lane.b32.xlu0 %v215_v4, %s620_s18  ;;  %v217_v5 = vcombine.low %v215_v4, %v215_v4 }
  0xa8   : > { %218 = vrot.lane.b32.xlu1 %v217_v5, %s621_s19 }
  0xac   : > { %229 = vperm.xlu1 %504, %v226_v6  }
 0x118   : > { %v222_v7 = vpop.permute.xlu0 %221 }
 0x119   : > { %426 = vmatpush3.msk.msra.mxu0 %vm223_vm6, %v222_v7 }
 0x11a   : > { %v219_v8 = vpop.permute.xlu1 %218  ;;  %427 = vmatprep.subr.mxu0 %v616_v0 }
 0x11b   : > { %v224_v10 = vsel %vm223_vm6, %v215_v4, %v219_v8 }
 0x11c   : > { %428 = vmatpush3.msra.mxu0 %v224_v10 }
 0x11d   : > { %430 = vmatmul.mubr.msk.f32.vlgmr.msra.gmra.mxu0 %vm232_vm7, %v225_v9 }
 0x127   : > { %v230_v11 = vpop.permute.xlu1 %229 }
 0x1dd   : > { %v304_v12 = vpop.f32.mrf.mxu0 }
 0x1de   : > { %v305_v13 = vadd.f32 %v304_v12, %v230_v11 }
 0x1df   : > { %v431_v14 = vpop.f32.mrf.mxu0 }
 0x1e0   : > { %309 = vst.msk [vmem:[%s188_s29] sm:$0xff] %vm308_vm8, %v305_v13 }
 0x1e1   : > { %546 = shalt.err (!%p543_p3)
}
 0x1e2   : > { %s547_s11 = scalar_lea.hbm %s732_s6, 128  ;;  %s551_s21 = scalar_lea.hbm %s775_s3, 256 }
 0x1e3   : > { %p548_p5 = scmp.ne.s32.totalorder %s732_s6, %s547_s11  ;;  %p552_p9 = scmp.lt.s32.totalorder %s732_s6, %s775_s3 }
 0x1e4   : > { %p553_p12 = scmp.lt.s32.totalorder %s551_s21, %s547_s11 }
 0x1e5   : > { %p549_p6 = pnand %p548_p5, %p683_p4 }
 0x1e6   : > { %p554_p10 = por %p553_p12, %p552_p9 }
 0x1e7   : > { %p550_p7 = pneg %p549_p6 }
 0x1e9   : > { %p555_p11 = pnand %p554_p10, %p550_p7 }
 0x1eb   : > { %558 = shalt.err (!%p555_p11)
}
 0x1ec   : > { %436 = dma.vmem_to_hbm [thread:$0]  (%p683_p4), %s326_s30, 128, %s732_s6, %s311_s7  }
 0x1ed PF: > { %p448_p13 = scmp.ge.s32.totalorder %s613_s17, 2  ;;  %s337_s27 = sand.u32 1, %s593_s12  }
 0x1ee   : > { %s338_s28 = scalar_lea.sflag [#allocation5], %s337_s27 }
 0x1ef   : > { %p443_p0 = pnand %p448_p13, %p690_p8 }
 0x1f1   : > { %p444_p1 = pneg %p443_p0 }
 0x1f3   : > { %588 = dma.done.wait (%p444_p1), %s338_s28, 128  }
 0x1f4   : > { %590 = vsyncadd (%p444_p1), %s338_s28, 4294967168  ;;  %s17_s17 = sadd.s32 1, %s613_s17   ;;  %s780_s12 = smov %s597_s13 }
 0x1f5   : > { %p14_p2 = scmp.ge.s32.totalorder %s17_s17, 4   ;;  %s781_s13 = smov %s601_s14 }
 0x1f6   : > { %s782_s14 = smov %s696_s25  ;;  %s783_s15 = smov %s609_s16 }
 0x1f7   : > { %s784_s16 = smov %s786_s20  ;;  %16 = sbr.rel (!%p14_p2) target bundleno = 5 (0x5), region = 77 }
 0x1fc   :  { %343 = vsyncpa [#allocation4], 1 }
 0x1fd   :  { %345 = vsyncpa [#allocation4 + $0x1], 1 }
 0x1fe   :  { %346 = vsyncpa [#allocation5], 1 }
 0x1ff   :  { %348 = vsyncpa [#allocation5 + $0x1], 1 }

</bundles_post_ra>
